<compile_context>
chip_gen: v6e
topology: v6e:2x2x1
jax: 0.10.0
libtpu: 0.0.40
codegen_flags: <defaults>
</compile_context>

<pallas_src>
import jax
import jax.numpy as jnp
from jax.experimental import pallas as pl
from jax.experimental.pallas import tpu as pltpu


# ----------------------------------------------------------------------------
# PackedTensor stand-in (the DDP wrapper only needs the `.tensor` attribute).
# ----------------------------------------------------------------------------
class PackedTensor:
    def __init__(self, tensor):
        self.tensor = tensor


# ----------------------------------------------------------------------------
# Pallas kernel: fused 2-layer MLP forward (one batch tile per grid step).
#   out = leaky_relu(x @ W1 + b1, 0.2) @ W2 + b2
# x/W1/W2 are bf16 (MXU-friendly), accumulation and biases are f32.
# ----------------------------------------------------------------------------
def _mlp_kernel(x_ref, w1_ref, b1_ref, w2_ref, b2_ref, o_ref):
    h = jnp.dot(x_ref[...], w1_ref[...],
                preferred_element_type=jnp.float32) + b1_ref[...]
    h = jnp.maximum(h, 0.2 * h)                       # LeakyReLU(0.2)
    o = jnp.dot(h.astype(w2_ref.dtype), w2_ref[...],
                preferred_element_type=jnp.float32) + b2_ref[...]
    o_ref[...] = o.astype(o_ref.dtype)


def _pad_amount(n, m):
    return (-n) % m


def _choose_tb(batch):
    """Largest tile from the sweep set that still yields >= 2 grid steps
    (so megacore sharding can engage on v7x); floor of 8 rows."""
    for cand in (1024, 512, 256, 128, 64, 32, 16, 8):
        if batch >= 2 * cand:
            return cand
    return 8


def mlp_forward(x, w1, b1, w2, b2, *, tb=None):
    """Tiled over the batch dimension; weights stay resident (constant-index
    BlockSpecs).  Feature dims are padded to 128 lanes, batch to the tile."""
    B, D_in = x.shape
    H = w1.shape[1]
    D_out = w2.shape[1]

    # --- lane-dense padding of every feature axis to a multiple of 128 ------
    d_in_p = D_in + _pad_amount(D_in, 128)
    h_p = H + _pad_amount(H, 128)
    d_out_p = D_out + _pad_amount(D_out, 128)

    x_p = jnp.pad(x, ((0, 0), (0, d_in_p - D_in))).astype(jnp.bfloat16)
    w1_p = jnp.pad(w1, ((0, d_in_p - D_in), (0, h_p - H))).astype(jnp.bfloat16)
    b1_p = jnp.pad(b1, ((0, 0), (0, h_p - H))).astype(jnp.float32)
    w2_p = jnp.pad(w2, ((0, h_p - H), (0, d_out_p - D_out))).astype(jnp.bfloat16)
    b2_p = jnp.pad(b2, ((0, 0), (0, d_out_p - D_out))).astype(jnp.float32)

    # --- batch tiling: large tiles, ragged B handled by zero-padding --------
    if tb is None:
        tb = _choose_tb(B)
    B_p = B + _pad_amount(B, tb)
    if B_p != B:
        x_p = jnp.pad(x_p, ((0, B_p - B), (0, 0)))
    grid = (B_p // tb,)

    # --- VMEM budget (double-buffered streams + resident weights), with ------
    # headroom, capped so it stays safe on v7x's 64 MiB physical VMEM.
    vmem_needed = (
        2 * tb * d_in_p * 2          # x tile, bf16, double-buffered
        + 2 * tb * d_out_p * 4       # out tile, f32, double-buffered
        + 2 * (d_in_p * h_p + h_p * d_out_p) * 2   # weights, bf16
        + 2 * (h_p + d_out_p) * 4                  # biases, f32
    )
    vmem_limit = int(min(max(2 * vmem_needed, 16 << 20), 48 << 20))

    out_p = pl.pallas_call(
        _mlp_kernel,
        out_shape=jax.ShapeDtypeStruct((B_p, d_out_p), jnp.float32),
        grid_spec=pltpu.PrefetchScalarGridSpec(
            num_scalar_prefetch=0,
            grid=grid,
            in_specs=[
                pl.BlockSpec((tb, d_in_p), lambda i: (i, 0)),     # x tile
                pl.BlockSpec((d_in_p, h_p), lambda i: (0, 0)),    # W1 (resident)
                pl.BlockSpec((1, h_p), lambda i: (0, 0)),         # b1
                pl.BlockSpec((h_p, d_out_p), lambda i: (0, 0)),   # W2 (resident)
                pl.BlockSpec((1, d_out_p), lambda i: (0, 0)),     # b2
            ],
            out_specs=pl.BlockSpec((tb, d_out_p), lambda i: (i, 0)),
        ),
        compiler_params=pltpu.CompilerParams(
            dimension_semantics=("parallel",),
            vmem_limit_bytes=vmem_limit,
        ),
    )(x_p, w1_p, b1_p, w2_p, b2_p)

    # Slice away batch / lane padding.
    return out_p[:B, :D_out]


# ----------------------------------------------------------------------------
# The wrapped net (simple MLP) and the DDP wrapper itself.
# ----------------------------------------------------------------------------
class SimpleNet:
    """2-layer MLP whose forward runs in the Pallas kernel above."""

    def __init__(self, key, d_in, hidden, d_out, dtype=jnp.float32):
        k1, k2 = jax.random.split(key)
        self.w1 = jax.random.normal(k1, (d_in, hidden), dtype) * 0.05
        self.b1 = jnp.zeros((1, hidden), dtype)
        self.w2 = jax.random.normal(k2, (hidden, d_out), dtype) * 0.05
        self.b2 = jnp.zeros((1, d_out), dtype)
        # TODO(synk): spectral_norm (power-iteration weight normalization) from the
        # original GAN script is not reproduced; weights are used as-is.

    def __call__(self, x):
        return mlp_forward(x, self.w1, self.b1, self.w2, self.b2)


class DDP:
    """Faithful port of the PyTorch DDP wrapper's forward semantics:
    unwrap PackedTensor args to `.tensor`, then call the wrapped net."""

    def __init__(self, net):
        self.net = net

    def sample(self, *args, **kwargs):
        return self.net.sample(*args, **kwargs)

    def __call__(self, *args):
        inputs = []
        for arg in args:
            if isinstance(arg, PackedTensor):
                inputs.append(arg.tensor)
            else:
                inputs.append(arg)
        return self.net(*inputs)


# ----------------------------------------------------------------------------
if __name__ == "__main__":
    key = jax.random.PRNGKey(0)
    k_net, k_x = jax.random.split(key)

    # Small but non-trivial shapes: tb=32 -> 2 grid steps (exercises megacore
    # sharding on v7x); feature dims get padded to 128 lanes inside the wrapper.
    B, D_IN, HIDDEN, D_OUT = 64, 32, 64, 16

    net = SimpleNet(k_net, D_IN, HIDDEN, D_OUT)
    ddp = DDP(net)

    x = jax.random.normal(k_x, (B, D_IN), jnp.float32)
    packed = PackedTensor(x)          # exercise the PackedTensor-unwrapping path

    out = ddp(packed)
    out = jax.block_until_ready(out)

    # Sanity check against a plain-JAX f32 reference of the wrapped net
    # (tolerance loosened: kernel operands are bf16 with f32 accumulation).
    h_ref = jnp.dot(x, net.w1) + net.b1
    h_ref = jnp.where(h_ref > 0, h_ref, 0.2 * h_ref)
    ref = jnp.dot(h_ref, net.w2) + net.b2
    assert out.shape == (B, D_OUT)
    assert jnp.allclose(out, ref, atol=2e-2, rtol=2e-2)

    print("KERNEL_OK")
</pallas_src>

<mosaic_0001>
module attributes {stable_mosaic.version = 11 : i64} {
  func.func @_mlp_kernel(%arg0: i32, %arg1: memref<32x128xbf16, #tpu.memory_space<vmem>>, %arg2: memref<128x128xbf16, #tpu.memory_space<vmem>>, %arg3: memref<1x128xf32, #tpu.memory_space<vmem>>, %arg4: memref<128x128xbf16, #tpu.memory_space<vmem>>, %arg5: memref<1x128xf32, #tpu.memory_space<vmem>>, %arg6: memref<32x128xf32, #tpu.memory_space<vmem>>) attributes {dimension_semantics = [#tpu.dimension_semantics<parallel>], iteration_bounds = array<i64: 2>, scalar_prefetch = 0 : i64, scratch_operands = 0 : i64, tpu.core_type = #tpu.core_type<tc>, window_params = [{transform_indices = @transform_0, window_bounds = array<i64: 32, 128>}, {pipeline_mode = #tpu.pipeline_mode<synchronous>, transform_indices = @transform_1, window_bounds = array<i64: 128, 128>}, {pipeline_mode = #tpu.pipeline_mode<synchronous>, transform_indices = @transform_2, window_bounds = array<i64: 1, 128>}, {pipeline_mode = #tpu.pipeline_mode<synchronous>, transform_indices = @transform_3, window_bounds = array<i64: 128, 128>}, {pipeline_mode = #tpu.pipeline_mode<synchronous>, transform_indices = @transform_4, window_bounds = array<i64: 1, 128>}, {transform_indices = @transform_5, window_bounds = array<i64: 32, 128>}]} {
    %c0 = arith.constant 0 : index
    %c0_0 = arith.constant 0 : index
    %0 = vector.load %arg1[%c0, %c0_0] : memref<32x128xbf16, #tpu.memory_space<vmem>>, vector<32x128xbf16>
    %c0_1 = arith.constant 0 : index
    %c0_2 = arith.constant 0 : index
    %1 = vector.load %arg2[%c0_1, %c0_2] : memref<128x128xbf16, #tpu.memory_space<vmem>>, vector<128x128xbf16>
    %cst = arith.constant dense<0.000000e+00> : vector<32x128xf32>
    %2 = tpu.matmul %0, %1, %cst {dimension_numbers = #tpu.dot_dimension_numbers<[1], [0], [0], [1], [0, 0, 1, 1], [], []>} : vector<32x128xbf16>, vector<128x128xbf16>, vector<32x128xf32> -> vector<32x128xf32>
    %c0_3 = arith.constant 0 : index
    %c0_4 = arith.constant 0 : index
    %3 = vector.load %arg3[%c0_3, %c0_4] : memref<1x128xf32, #tpu.memory_space<vmem>>, vector<1x128xf32>
    %4 = vector.broadcast %3 : vector<1x128xf32> to vector<32x128xf32>
    %5 = arith.addf %2, %4 : vector<32x128xf32>
    %cst_5 = arith.constant 2.000000e-01 : f32
    %6 = vector.broadcast %cst_5 : f32 to vector<32x128xf32>
    %7 = arith.mulf %6, %5 : vector<32x128xf32>
    %8 = arith.maximumf %5, %7 : vector<32x128xf32>
    %9 = arith.truncf %8 : vector<32x128xf32> to vector<32x128xbf16>
    %c0_6 = arith.constant 0 : index
    %c0_7 = arith.constant 0 : index
    %10 = vector.load %arg4[%c0_6, %c0_7] : memref<128x128xbf16, #tpu.memory_space<vmem>>, vector<128x128xbf16>
    %cst_8 = arith.constant dense<0.000000e+00> : vector<32x128xf32>
    %11 = tpu.matmul %9, %10, %cst_8 {dimension_numbers = #tpu.dot_dimension_numbers<[1], [0], [0], [1], [0, 0, 1, 1], [], []>} : vector<32x128xbf16>, vector<128x128xbf16>, vector<32x128xf32> -> vector<32x128xf32>
    %c0_9 = arith.constant 0 : index
    %c0_10 = arith.constant 0 : index
    %12 = vector.load %arg5[%c0_9, %c0_10] : memref<1x128xf32, #tpu.memory_space<vmem>>, vector<1x128xf32>
    %13 = vector.broadcast %12 : vector<1x128xf32> to vector<32x128xf32>
    %14 = arith.addf %11, %13 : vector<32x128xf32>
    %c0_11 = arith.constant 0 : index
    %c0_12 = arith.constant 0 : index
    %15 = vector.load %arg6[%c0_11, %c0_12] : memref<32x128xf32, #tpu.memory_space<vmem>>, vector<32x128xf32>
    tpu.vector_store %arg6[%c0_11, %c0_12], %14 {strides = array<i32>} : memref<32x128xf32, #tpu.memory_space<vmem>>, vector<32x128xf32>,
    return
  }
  func.func @transform_0(%arg0: i32) -> (i32, i32) {
    %c0_i32 = arith.constant 0 : i32
    %c0_i32_0 = arith.constant 0 : i32
    return %arg0, %c0_i32 : i32, i32
  }
  func.func @transform_1(%arg0: i32) -> (i32, i32) {
    %c0_i32 = arith.constant 0 : i32
    %c0_i32_0 = arith.constant 0 : i32
    %c0_i32_1 = arith.constant 0 : i32
    return %c0_i32, %c0_i32_0 : i32, i32
  }
  func.func @transform_2(%arg0: i32) -> (i32, i32) {
    %c0_i32 = arith.constant 0 : i32
    %c0_i32_0 = arith.constant 0 : i32
    %c0_i32_1 = arith.constant 0 : i32
    return %c0_i32, %c0_i32_0 : i32, i32
  }
  func.func @transform_3(%arg0: i32) -> (i32, i32) {
    %c0_i32 = arith.constant 0 : i32
    %c0_i32_0 = arith.constant 0 : i32
    %c0_i32_1 = arith.constant 0 : i32
    return %c0_i32, %c0_i32_0 : i32, i32
  }
  func.func @transform_4(%arg0: i32) -> (i32, i32) {
    %c0_i32 = arith.constant 0 : i32
    %c0_i32_0 = arith.constant 0 : i32
    %c0_i32_1 = arith.constant 0 : i32
    return %c0_i32, %c0_i32_0 : i32, i32
  }
  func.func @transform_5(%arg0: i32) -> (i32, i32) {
    %c0_i32 = arith.constant 0 : i32
    %c0_i32_0 = arith.constant 0 : i32
    return %arg0, %c0_i32 : i32, i32
  }
}

</mosaic_0001>

<bundles_post_ra>
// kernel: tpu_custom_call.1
= control target key start
LH: loop header
LB: loop body
LE: loop exit
PB: predicated region body
PF: predicated region fallthrough
CT: control target
= control target key end

     0   :  { %10 = vsyncpa [#allocation3], 0  ;;  %s1236_s0 = inlined_call_operand.hbm [shape: bf16[64,128], index: 0, kind: input, shape index: {}]   ;;  %s1237_s1 = inlined_call_operand.hbm [shape: bf16[128,128], index: 1, kind: input, shape index: {}]   ;;  %s1238_s2 = inlined_call_operand.vmem [shape: f32[1,128], index: 2, kind: input, shape index: {}]   ;;  %s1239_s3 = inlined_call_operand.hbm [shape: bf16[128,128], index: 3, kind: input, shape index: {}]   ;;  %s1240_s4 = inlined_call_operand.vmem [shape: f32[1,128], index: 4, kind: input, shape index: {}]   ;;  %s1241_s5 = inlined_call_operand.hbm [shape: f32[64,128], index: 5, kind: output, shape index: {}]  }
   0x1   :  { %12 = vsyncpa [#allocation3 + $0x1], 0 }
   0x2   :  { %13 = vsyncpa [#allocation6], 0 }
   0x3   :  { %14 = vsyncpa [#allocation4], 0 }
   0x4   :  { %16 = vsyncpa [#allocation4 + $0x1], 0  ;;  %s1028_s18 = smov 0   ;;  %s1030_s19 = smov 0  }
   0x5   :  { %s1032_s20 = smov 0   ;;  %s1034_s21 = smov 0  }
   0x6 LB: > { %s1049_s22 = sadd.s32 4294967295, %s988_s21   ;;  %s651_s23 = sadd.s32 4294967294, %s988_s21   ;;  %s988_s21 = sphi %s1034_s21, %s1264_s21   ;;  %s984_s20 = sphi %s1032_s20, %s1263_s20   ;;  %s980_s19 = sphi %s1030_s19, %s1262_s19   ;;  %s976_s18 = sphi %s1028_s18, %s1261_s18  }
   0x7   : > { %p42_p0 = scmp.ne.s32.totalorder %s980_s19, %s976_s18  ;;  %p1242_p1 = scmp.eq.s32.totalorder %s1049_s22, 0 }
   0x8   : > { %p150_p2 = scmp.eq.s32.totalorder %s1049_s22, 1  ;;  %p156_p3 = scmp.eq.s32.totalorder %s651_s23, 1 }
   0x9   : > { %p1058_p4 = por %p1242_p1, %p42_p0  ;;  %p652_p5 = scmp.ge.s32.totalorder %s988_s21, 1 }
   0xa   : > { %p1063_p6 = por %p156_p3, %p42_p0  ;;  %p163_p7 = scmp.lt.s32.totalorder %s988_s21, 3 }
   0xb   : > { %s1247_s24 = scalar_select %p1058_p4, 1, 0 }
   0xc   : > { %s1248_s25 = scalar_select %p1063_p6, 1, 0 }
   0xd   : > { %p1068_p8 = pnand %p652_p5, %p163_p7  ;;  %s990_s27 = smov [#allocation5]  }
   0xe   : > { %s175_s28 = sshll.u32 %s990_s27, 4  ;;  %s991_s30 = smov [#allocation7]   ;;  %s176_s28 = int_to_ptr.vmem [resolvable:$true] %s175_s28 }
   0xf   : > { %s1249_s26 = scalar_select %p1068_p8, 1, 0 }
  0x10   : > { %p763_p9 = pneg %p1068_p8  ;;  %s191_s6 = sshll.u32 %s991_s30, 4  ;;  %s192_s6 = int_to_ptr.vmem [resolvable:$true] %s191_s6 }
  0x11   : > { %s851_s7 = scalar_lea.vmem %s176_s28, 1024  ;;  %p859_p5 = scmp.lt.s32.totalorder %s176_s28, %s176_s28 }
  0x12   : > { %p1077_p11 = pnand %p763_p9, %p1242_p1  ;;  %p852_p13 = scmp.ne.s32.totalorder %s176_s28, %s851_s7 }
  0x13   : > { %p860_p7 = scmp.lt.s32.totalorder %s851_s7, %s851_s7 }
  0x14   : > { %p842_p12 = pneg %p1077_p11 }
  0x15   : > { %p861_p10 = por %p860_p7, %p859_p5 }
  0x16   : > { %p854_p0 = pnand %p852_p13, %p842_p12 }
  0x18   : > { %p855_p3 = pneg %p854_p0 }
  0x1a   : > { %p862_p9 = pnand %p861_p10, %p855_p3 }
  0x1c   : > { %865 = shalt.err (!%p862_p9)
}
  0x1d   : > { %s1243_s8 = smov 64   ;;  %s993_s9 = smov 4  }
  0x1e   : > { %766 = dma.hbm_to_vmem [thread:$0]  (!%p1077_p11), %s1237_s1, 1024, %s176_s28, [#allocation6], %s1243_s8, %s1243_s8, %s993_s9  }
  0x1f   : > { %s877_s12 = scalar_lea.vmem %s192_s6, 1024  ;;  %p885_p10 = scmp.lt.s32.totalorder %s192_s6, %s192_s6 }
  0x20   : > { %p878_p13 = scmp.ne.s32.totalorder %s192_s6, %s877_s12  ;;  %p886_p3 = scmp.lt.s32.totalorder %s877_s12, %s877_s12 }
  0x22   : > { %p880_p0 = pnand %p878_p13, %p842_p12  ;;  %p887_p7 = por %p886_p3, %p885_p10 }
  0x24   : > { %p881_p5 = pneg %p880_p0 }
  0x26   : > { %p888_p9 = pnand %p887_p7, %p881_p5 }
  0x28   : > { %891 = shalt.err (!%p888_p9)
}
  0x29   : > { %769 = dma.hbm_to_vmem [thread:$0]  (!%p1077_p11), %s1239_s3, 1024, %s192_s6, [#allocation6], %s1243_s8, %s1243_s8, %s993_s9  }
  0x2a   : > { %s1106_s15 = sadd.s32 1, %s988_s21   ;;  %s29_s16 = sadd.s32 1, %s984_s20 }
  0x2b   : > { %s26_s17 = ssub.s32 %s988_s21, %s1106_s15  ;;  %p36_p12 = scmp.ne.s32.totalorder %s984_s20, %s980_s19 }
  0x2c   : > { %p27_p13 = scmp.eq.s32.totalorder %s26_s17, 0  ;;  %p37_p0 = scmp.eq.s32.totalorder %s988_s21, 0 }
  0x2d   : > { %p1116_p5 = por %p150_p2, %p36_p12  ;;  %p780_p10 = scmp.lt.s32.totalorder %s988_s21, 2 }
  0x2e   : > { %s1122_s27 = scalar_select %p27_p13, %s984_s20, %s29_s16  }
  0x2f   : > { %s1251_s23 = scalar_select %p1116_p5, 1, 0 }
  0x30   : > { %p38_p3 = por %p37_p0, %p36_p12  ;;  %s208_s28 = sand.u32 1, %s984_s20  }
  0x31   : > { %s656_s29 = sshll.u32 %s208_s28, 4  ;;  %s689_s30 = sshll.u32 %s988_s21, 8 }
  0x32   : > { %s1129_s10 = scalar_lea.hbm %s1236_s0, %s689_s30  ;;  %s212_s11 = scalar_lea.vmem [#allocation2], %s656_s29 }
  0x33   : > { %s219_s12 = sshll.u32 %s212_s11, 4  ;;  %p1133_p2 = pnand %p780_p10, %p38_p3  ;;  %s1131_s12 = int_to_ptr.vmem [resolvable:$true] %s219_s12 }
  0x34   : > { %s1137_s14 = scalar_lea.sflag [#allocation3], %s208_s28  ;;  %s892_s16 = scalar_lea.hbm %s1129_s10, 256 }
  0x35   : > { %p893_p11 = scmp.ne.s32.totalorder %s1129_s10, %s892_s16  ;;  %p894_p7 = pneg %p1133_p2 }
  0x36   : > { %s897_s29 = scalar_lea.hbm %s1236_s0, 512  ;;  %p898_p13 = scmp.lt.s32.totalorder %s1129_s10, %s1236_s0 }
  0x37   : > { %p895_p9 = pnand %p894_p7, %p893_p11  ;;  %p899_p0 = scmp.lt.s32.totalorder %s897_s29, %s892_s16 }
  0x39   : > { %p896_p12 = pneg %p895_p9  ;;  %p900_p10 = por %p899_p0, %p898_p13 }
  0x3b   : > { %p901_p3 = pnand %p900_p10, %p896_p12 }
  0x3d   : > { %904 = shalt.err (!%p901_p3)
}
  0x3e   : > { %s905_s28 = scalar_lea.vmem %s1131_s12, 256  ;;  %s994_s11 = smov [#allocation2]  }
  0x3f   : > { %p906_p1 = scmp.ne.s32.totalorder %s1131_s12, %s905_s28  ;;  %s910_s8 = sshll.u32 %s994_s11, 4  ;;  %s911_s8 = int_to_ptr.vmem [resolvable:$false] %s910_s8 }
  0x40   : > { %s912_s17 = scalar_lea.vmem %s911_s8, 512  ;;  %p913_p9 = scmp.lt.s32.totalorder %s1131_s12, %s911_s8 }
  0x41   : > { %p908_p6 = pnand %p906_p1, %p894_p7  ;;  %p914_p5 = scmp.lt.s32.totalorder %s912_s17, %s905_s28 }
  0x43   : > { %p909_p11 = pneg %p908_p6  ;;  %p915_p4 = por %p914_p5, %p913_p9 }
  0x45   : > { %p916_p8 = pnand %p915_p4, %p909_p11 }
  0x47   : > { %919 = shalt.err (!%p916_p8)
}
  0x48   : > { %s1253_s16 = smov 64   ;;  %p1254_p1 = scmp.ne.s32.totalorder %s1249_s26, 0 }
  0x49   : > { %773 = dma.hbm_to_vmem [thread:$0]  (!%p1133_p2), %s1129_s10, 256, %s1131_s12, %s1137_s14, %s1253_s16, %s1253_s16, %s993_s9  }
  0x4a   : > { %231 = sbr.rel (%p1254_p1) target bundleno = 539 (0x21b), region = 40  ;;  %s1164_s30 = sand.u32 (!%p1254_p1), 1, %s980_s19  }
  0x4b   : > { %s660_s8 = sshll.u32 (!%p1254_p1), %s1164_s30, 4  ;;  %s234_s29 = scalar_lea.sflag (!%p1254_p1), [#allocation3], %s1164_s30 }
  0x4c   : > { %s1168_s6 = scalar_lea.vmem (!%p1254_p1), [#allocation2], %s660_s8  ;;  %p1255_p4 = scmp.ne.s32.totalorder (!%p1254_p1), %s1247_s24, 0 }
  0x4f   : > { %963 = dma.done.wait (%p1255_p4), %s234_s29, 256  }
  0x50   : > { %965 = vsyncadd (%p1255_p4), %s234_s29, 4294967040  ;;  %p1256_p6 = scmp.eq.s32.totalorder %s1049_s22, 0 }
  0x52   : > { %967 = dma.done.wait (%p1256_p6), [#allocation6], 2048   ;;  %p1257_p8 = pmov %p1256_p6 }
  0x53   : > { %v822_v0 = vld [vmem:[#allocation5 + $0x38] sm:$0xff]   ;;  %v823_v1 = vld [vmem:[#allocation5 + $0x30] sm:$0xff]   ;;  %v824_v2 = vld [vmem:[#allocation5 + $0x28] sm:$0xff]   ;;  %s663_s9 = sshll.u32 %s1164_s30, 5  ;;  %s690_s7 = sshll.u32 %s1049_s22, 9 }
  0x54   : > { %969 = vsyncadd (%p1257_p8), [#allocation6], 4294965248  ;;  %711 = vmatprep.subr.bf16.mxu0 %v822_v0  ;;  %v825_v3 = vld [vmem:[#allocation5 + $0x20] sm:$0xff]   ;;  %v832_v5 = vld [vmem:[#allocation7 + $0x38] sm:$0xff]   ;;  %s271_s13 = scalar_lea.vmem [#allocation8], %s663_s9  ;;  %s1193_s17 = scalar_lea.hbm %s1241_s5, %s690_s7 }
  0x55   : > { %712 = vmatpush3.bf16.msra.mxu0 %v822_v0  ;;  %v830_v4 = vld [vmem:[%s1168_s6] sm:$0xff]   ;;  %v826_v7 = vld [vmem:[#allocation5 + $0x18] sm:$0xff]   ;;  %731 = vmatprep.subr.bf16.mxu1 %v832_v5  ;;  %v834_v8 = vld [vmem:[#allocation7 + $0x28] sm:$0xff]   ;;  %s559_s14 = sshll.u32 %s271_s13, 4  ;;  %s546_s16 = scalar_lea.sflag [#allocation4], %s1164_s30  ;;  %s1188_s14 = int_to_ptr.vmem [resolvable:$true] %s559_s14 }
  0x56   : > { %713 = vmatprep.subr.bf16.mxu0 %v823_v1  ;;  %727 = vmatprep.mubr.bf16.mxu0 %v830_v4  ;;  %v833_v6 = vld [vmem:[#allocation7 + $0x30] sm:$0xff]   ;;  %v835_v10 = vld [vmem:[#allocation7 + $0x20] sm:$0xff]   ;;  %v828_v11 = vld [vmem:[#allocation5 + $0x8] sm:$0xff]   ;;  %s920_s8 = scalar_lea.vmem %s1188_s14, 512  ;;  %p1258_p2 = scmp.ne.s32.totalorder %s1251_s23, 0 }
  0x57   : > { %732 = vmatpush3.bf16.msra.mxu1 %v832_v5  ;;  %v827_v9 = vld [vmem:[#allocation5 + $0x10] sm:$0xff]   ;;  %v829_v12 = vld [vmem:[#allocation5] sm:$0xff]   ;;  %v831_v13 = vld [vmem:[%s1168_s6 + $0x8] sm:$0xff]   ;;  %p921_p5 = scmp.ne.s32.totalorder %s1188_s14, %s920_s8  ;;  %s995_s22 = smov [#allocation8]  }
  0x58   : > { %733 = vmatprep.subr.bf16.mxu1 %v833_v6  ;;  %v836_v14 = vld [vmem:[#allocation7 + $0x18] sm:$0xff]   ;;  %v837_v15 = vld [vmem:[#allocation7 + $0x10] sm:$0xff]   ;;  %v838_v16 = vld [vmem:[#allocation7 + $0x8] sm:$0xff]   ;;  %s924_s29 = sshll.u32 %s995_s22, 4  ;;  %s925_s29 = int_to_ptr.vmem [resolvable:$false] %s924_s29 }
  0x59   : > { %714 = vmatpush3.bf16.msra.mxu0 %v823_v1  ;;  %v839_v17 = vld [vmem:[#allocation7] sm:$0xff]   ;;  %p922_p7 = pnand %p921_p5, %p1258_p2  ;;  %s926_s6 = scalar_lea.vmem %s925_s29, 1024 }
  0x5a   : > { %715 = vmatprep.subr.bf16.mxu0 %v824_v2  ;;  %v664_v19 = vld [vmem:[%s1238_s2] ss:$0 sm:$0xff]  ;;  %p927_p13 = scmp.lt.s32.totalorder %s1188_s14, %s925_s29  ;;  %p928_p0 = scmp.lt.s32.totalorder %s926_s6, %s920_s8 }
  0x5b   : > { %734 = vmatpush3.bf16.msra.mxu1 %v833_v6  ;;  %v675_v37 = vld [vmem:[%s1240_s4] ss:$0 sm:$0xff]  ;;  %p923_p12 = pneg %p922_p7 }
  0x5c   : > { %735 = vmatprep.subr.bf16.mxu1 %v834_v8  ;;  %p929_p10 = por %p928_p0, %p927_p13 }
  0x5d   : > { %716 = vmatpush3.bf16.msra.mxu0 %v824_v2 }
  0x5e   : > { %717 = vmatprep.subr.bf16.mxu0 %v825_v3  ;;  %p930_p3 = pnand %p929_p10, %p923_p12 }
  0x5f   : > { %736 = vmatpush3.bf16.msra.mxu1 %v834_v8 }
  0x60   : > { %737 = vmatprep.subr.bf16.mxu1 %v835_v10 }
  0x61   : > { %718 = vmatpush3.bf16.msra.mxu0 %v825_v3 }
  0x62   : > { %719 = vmatprep.subr.bf16.mxu0 %v826_v7 }
  0x63   : > { %738 = vmatpush3.bf16.msra.mxu1 %v835_v10 }
  0x64   : > { %739 = vmatprep.subr.bf16.mxu1 %v836_v14 }
  0x65   : > { %720 = vmatpush3.bf16.msra.mxu0 %v826_v7 }
  0x66   : > { %721 = vmatprep.subr.bf16.mxu0 %v827_v9 }
  0x67   : > { %740 = vmatpush3.bf16.msra.mxu1 %v836_v14 }
  0x68   : > { %741 = vmatprep.subr.bf16.mxu1 %v837_v15 }
  0x69   : > { %722 = vmatpush3.bf16.msra.mxu0 %v827_v9 }
  0x6a   : > { %723 = vmatprep.subr.bf16.mxu0 %v828_v11 }
  0x6b   : > { %742 = vmatpush3.bf16.msra.mxu1 %v837_v15 }
  0x6c   : > { %743 = vmatprep.subr.bf16.mxu1 %v838_v16 }
  0x6d   : > { %724 = vmatpush3.bf16.msra.mxu0 %v828_v11 }
  0x6e   : > { %725 = vmatprep.subr.bf16.mxu0 %v829_v12 }
  0x6f   : > { %744 = vmatpush3.bf16.msra.mxu1 %v838_v16 }
  0x70   : > { %745 = vmatprep.subr.bf16.mxu1 %v839_v17 }
  0x71   : > { %726 = vmatpush3.bf16.msra.mxu0 %v829_v12 }
  0x73   : > { %746 = vmatpush3.bf16.msra.mxu1 %v839_v17 }
  0x74   : > { %728 = vmatmul.mubr.bf16.vlgmr.msra.gmra.mxu0 %v831_v13 }
 0x134   : > { %v729_v18 = vpop.f32.mrf.mxu0 }
 0x135   : > { %v405_v22 = vadd.f32 %v729_v18, %v664_v19 }
 0x136   : > { %v396_v20 = vpop.f32.mrf.mxu0 }
 0x137   : > { %v397_v21 = vadd.f32 %v664_v19, %v396_v20  ;;  %v413_v29 = vmul.f32 0.2, %v405_v22 }
 0x138   : > { %v730_v23 = vpop.f32.mrf.mxu0 }
 0x139   : > { %v408_v24 = vadd.f32 %v730_v23, %v664_v19  ;;  %v411_v26 = vmul.f32 0.2, %v397_v21  ;;  %v417_v34 = vmax.f32 %v405_v22, %v413_v29 }
 0x13a   : > { %v399_v25 = vpop.f32.mrf.mxu0 }
 0x13b   : > { %v414_v27 = vmul.f32 0.2, %v408_v24  ;;  %v400_v28 = vadd.f32 %v664_v19, %v399_v25  ;;  %v415_v32 = vmax.f32 %v397_v21, %v411_v26 }
 0x13d   : > { %v412_v30 = vmul.f32 0.2, %v400_v28  ;;  %v418_v31 = vmax.f32 %v408_v24, %v414_v27 }
 0x13f   : > { %v416_v33 = vmax.f32 %v400_v28, %v412_v30  ;;  %v420_v36 = vpack.c.bf16 %v418_v31, %v417_v34 }
 0x141   : > { %v419_v35 = vpack.c.bf16 %v416_v33, %v415_v32 }
 0x143   : > { %747 = vmatprep.mubr.bf16.mxu1 %v419_v35 }
 0x144   : > { %748 = vmatmul.mubr.bf16.vlgmr.msra.gmra.mxu1 %v420_v36 }
 0x204   : > { %v749_v38 = vpop.f32.mrf.mxu1 }
 0x205   : > { %v535_v39 = vadd.f32 %v749_v38, %v675_v37 }
 0x206   : > { %v526_v40 = vpop.f32.mrf.mxu1 }
 0x207   : > { %543 = vst [vmem:[%s271_s13 + $0x10] sm:$0xff] %v535_v39  ;;  %v527_v41 = vadd.f32 %v675_v37, %v526_v40 }
 0x208   : > { %v750_v42 = vpop.f32.mrf.mxu1 }
 0x209   : > { %541 = vst [vmem:[%s271_s13] sm:$0xff] %v527_v41  ;;  %v538_v43 = vadd.f32 %v750_v42, %v675_v37 }
 0x20a   : > { %v529_v44 = vpop.f32.mrf.mxu1 }
 0x20b   : > { %544 = vst [vmem:[%s271_s13 + $0x18] sm:$0xff] %v538_v43  ;;  %v530_v45 = vadd.f32 %v675_v37, %v529_v44 }
 0x20d   : > { %542 = vst [vmem:[%s271_s13 + $0x8] sm:$0xff] %v530_v45 }
 0x20e   : > { %933 = shalt.err (!%p930_p3)
}
 0x20f   : > { %s934_s24 = scalar_lea.hbm %s1193_s17, 512  ;;  %s938_s10 = scalar_lea.hbm %s1241_s5, 1024 }
 0x210   : > { %p935_p11 = scmp.ne.s32.totalorder %s1193_s17, %s934_s24  ;;  %p939_p4 = scmp.lt.s32.totalorder %s1193_s17, %s1241_s5 }
 0x211   : > { %p940_p6 = scmp.lt.s32.totalorder %s938_s10, %s934_s24 }
 0x212   : > { %p936_p9 = pnand %p935_p11, %p1258_p2 }
 0x213   : > { %p941_p8 = por %p940_p6, %p939_p4 }
 0x214   : > { %p937_p1 = pneg %p936_p9 }
 0x216   : > { %p942_p5 = pnand %p941_p8, %p937_p1 }
 0x218   : > { %945 = shalt.err (!%p942_p5)
}
 0x219   : > { %s996_s7 = smov 128   ;;  %s997_s28 = smov 8  }
 0x21a   : > { %761 = dma.vmem_to_hbm [thread:$0]  (%p1258_p2), %s1188_s14, 512, %s1193_s17, %s546_s16, %s996_s7, %s996_s7, %s997_s28  }
 0x21b PF: > { %s574_s11 = sand.u32 1, %s976_s18   ;;  %p1259_p7 = scmp.ne.s32.totalorder %s1248_s25, 0 }
 0x21c   : > { %p1260_p12 = scmp.ge.s32.totalorder %s988_s21, 2  ;;  %s575_s8 = scalar_lea.sflag [#allocation4], %s574_s11 }
 0x21e   : > { %p775_p13 = pnand %p1260_p12, %p1259_p7 }
 0x220   : > { %p776_p0 = pneg %p775_p13 }
 0x222   : > { %971 = dma.done.wait (%p776_p0), %s575_s8, 512  }
 0x223   : > { %973 = vsyncadd (%p776_p0), %s575_s8, 4294966784  ;;  %p19_p10 = scmp.ge.s32.totalorder %s1106_s15, 4   ;;  %s1261_s18 = smov %s980_s19 }
 0x224   : > { %s1262_s19 = smov %s984_s20  ;;  %s1263_s20 = smov %s1122_s27 }
 0x225   : > { %s1264_s21 = smov %s1106_s15  ;;  %21 = sbr.rel (!%p19_p10) target bundleno = 6 (0x6), region = 93 }
 0x22a   :  { %580 = vsyncpa [#allocation3], 1 }
 0x22b   :  { %582 = vsyncpa [#allocation3 + $0x1], 1 }
 0x22c   :  { %583 = vsyncpa [#allocation6], 1 }
 0x22d   :  { %584 = vsyncpa [#allocation4], 1 }
 0x22e   :  { %586 = vsyncpa [#allocation4 + $0x1], 1 }

</bundles_post_ra>
